<compile_context>
chip_gen: v6e
topology: v6e:2x2x1
jax: 0.10.0
libtpu: 0.0.40
codegen_flags: <defaults>
</compile_context>

<pallas_src>
import functools

import numpy as np

import jax
import jax.numpy as jnp
from jax.experimental import pallas as pl
from jax.experimental.pallas import tpu as pltpu

FREQS = (0.5, 1.0, 2.0, 4.0, 8.0)
NEG_SLOPE = 0.2


def _leaky_relu(h):
    return jnp.where(h > 0, h, NEG_SLOPE * h)


def posenc_mlp_kernel(x_ref, freq_ref, phase_ref,
                      w1_ref, b1_ref,
                      w2_ref, b2_ref,
                      w3_ref, b3_ref,
                      w4_ref, b4_ref,
                      o_ref,
                      *, n_rep):
    x = x_ref[...].astype(jnp.float32)                      # (TB, nin)

    # --- Fused PositionalEncoder -------------------------------------------
    #   enc[:, k*nin:(k+1)*nin]      = sin(x * f_k)              k <  len(freqs)
    #   enc[:, (k+F)*nin:(k+F+1)*nin] = cos(x * f_k) = sin(x*f_k + pi/2)
    # One lane-dense EUP pass instead of 10 lane-sparse sin/cos + a concat.
    xr = jnp.tile(x, (1, n_rep))                             # (TB, nin * 2F)
    enc = jnp.sin(xr * freq_ref[...] + phase_ref[...])       # (TB, nin * 2F)

    # --- MLP4: Linear -> LeakyReLU(0.2) x3 -> Linear ------------------------
    h = jnp.dot(enc, w1_ref[...], preferred_element_type=jnp.float32) + b1_ref[...]
    h = _leaky_relu(h)
    h = jnp.dot(h, w2_ref[...], preferred_element_type=jnp.float32) + b2_ref[...]
    h = _leaky_relu(h)
    h = jnp.dot(h, w3_ref[...], preferred_element_type=jnp.float32) + b3_ref[...]
    h = _leaky_relu(h)
    h = jnp.dot(h, w4_ref[...], preferred_element_type=jnp.float32) + b4_ref[...]

    o_ref[...] = h.astype(o_ref.dtype)


def posenc_mlp(x, params, freqs=FREQS, block_b=1024):
    """x: (B, nin) float32. params: w1..w4 stored as (in, out), b1..b4 as (1, out)."""
    B, nin = x.shape
    nout = params["w4"].shape[1]
    nfreq = len(freqs)
    d_enc = nin * 2 * nfreq

    # Batch tile: multiple of 8; pad B so the grid divides evenly.
    if B >= block_b:
        TB = block_b
    else:
        TB = max(8, -(-B // 8) * 8)              # round B up to a multiple of 8
    B_pad = -(-B // TB) * TB
    x_in = jnp.pad(x, ((0, B_pad - B), (0, 0))) if B_pad != B else x

    # Constant encoder rows (lane-dense, shape (1, d_enc)).
    f = np.asarray(freqs, np.float32)
    freq_row = jnp.asarray(
        np.concatenate([np.repeat(f, nin), np.repeat(f, nin)])[None, :],
        jnp.float32)
    phase_row = jnp.asarray(
        np.concatenate([np.zeros(nin * nfreq, np.float32),
                        np.full(nin * nfreq, np.pi / 2.0, np.float32)])[None, :],
        jnp.float32)

    def resident(shape):
        # Full-array block with a constant index_map -> no re-DMA across steps.
        return pl.BlockSpec(shape, lambda i: (0, 0))

    grid = (B_pad // TB,)

    out = pl.pallas_call(
        functools.partial(posenc_mlp_kernel, n_rep=2 * nfreq),
        out_shape=jax.ShapeDtypeStruct((B_pad, nout), jnp.float32),
        grid=grid,
        in_specs=[
            pl.BlockSpec((TB, nin), lambda i: (i, 0)),       # x tile
            resident((1, d_enc)),                            # freq row
            resident((1, d_enc)),                            # phase row
            resident(params["w1"].shape), resident(params["b1"].shape),
            resident(params["w2"].shape), resident(params["b2"].shape),
            resident(params["w3"].shape), resident(params["b3"].shape),
            resident(params["w4"].shape), resident(params["b4"].shape),
        ],
        out_specs=pl.BlockSpec((TB, nout), lambda i: (i, 0)),
        compiler_params=pltpu.CompilerParams(
            dimension_semantics=("parallel",)),              # 2 TCs on v7x
    )(x_in, freq_row, phase_row,
      params["w1"], params["b1"],
      params["w2"], params["b2"],
      params["w3"], params["b3"],
      params["w4"], params["b4"])

    return out[:B] if B_pad != B else out


def init_params(key, nin, nout, nh, freqs=FREQS):
    """Deterministic init matching PyTorch Linear shapes (stored as (in, out))."""
    d_enc = nin * len(freqs) * 2
    dims = [(d_enc, nh), (nh, nh), (nh, nh), (nh, nout)]
    params = {}
    for i, (din, dout) in enumerate(dims, start=1):
        key, kw, kb = jax.random.split(key, 3)
        bound = 1.0 / float(np.sqrt(din))
        params[f"w{i}"] = jax.random.uniform(
            kw, (din, dout), jnp.float32, -bound, bound)
        params[f"b{i}"] = jax.random.uniform(
            kb, (1, dout), jnp.float32, -bound, bound)
    return params


def reference(x, params, freqs=FREQS):
    """Plain-JAX reference of the same forward (for a sanity check)."""
    sines = [jnp.sin(x * f) for f in freqs]
    coses = [jnp.cos(x * f) for f in freqs]
    h = jnp.concatenate(sines + coses, axis=1)

    def lrelu(z):
        return jnp.where(z > 0, z, NEG_SLOPE * z)

    h = lrelu(h @ params["w1"] + params["b1"])
    h = lrelu(h @ params["w2"] + params["b2"])
    h = lrelu(h @ params["w3"] + params["b3"])
    return h @ params["w4"] + params["b4"]


if __name__ == "__main__":
    key = jax.random.PRNGKey(0)
    kx, kx2, kp = jax.random.split(key, 3)

    nin, nout, nh = 4, 4, 32

    # Small batch, exact multiple of 8.
    B = 8
    x = jax.random.normal(kx, (B, nin), jnp.float32)
    params = init_params(kp, nin, nout, nh)

    out = jax.block_until_ready(posenc_mlp(x, params))
    ref = reference(x, params)
    assert out.shape == (B, nout)
    assert jnp.allclose(out, ref, atol=1e-4, rtol=1e-4)

    # Ragged batch (exercises the padding / tail path).
    B2 = 50
    x2 = jax.random.normal(kx2, (B2, nin), jnp.float32)
    out2 = jax.block_until_ready(posenc_mlp(x2, params))
    ref2 = reference(x2, params)
    assert out2.shape == (B2, nout)
    assert jnp.allclose(out2, ref2, atol=1e-4, rtol=1e-4)

    print("KERNEL_OK")
</pallas_src>

<mosaic_0001>
module attributes {stable_mosaic.version = 11 : i64} {
  func.func @posenc_mlp_kernel(%arg0: i32, %arg1: memref<8x4xf32, #tpu.memory_space<vmem>>, %arg2: memref<1x40xf32, #tpu.memory_space<vmem>>, %arg3: memref<1x40xf32, #tpu.memory_space<vmem>>, %arg4: memref<40x32xf32, #tpu.memory_space<vmem>>, %arg5: memref<1x32xf32, #tpu.memory_space<vmem>>, %arg6: memref<32x32xf32, #tpu.memory_space<vmem>>, %arg7: memref<1x32xf32, #tpu.memory_space<vmem>>, %arg8: memref<32x32xf32, #tpu.memory_space<vmem>>, %arg9: memref<1x32xf32, #tpu.memory_space<vmem>>, %arg10: memref<32x4xf32, #tpu.memory_space<vmem>>, %arg11: memref<1x4xf32, #tpu.memory_space<vmem>>, %arg12: memref<8x4xf32, #tpu.memory_space<vmem>>) attributes {dimension_semantics = [#tpu.dimension_semantics<parallel>], iteration_bounds = array<i64: 1>, scalar_prefetch = 0 : i64, scratch_operands = 0 : i64, tpu.core_type = #tpu.core_type<tc>, window_params = [{transform_indices = @transform_0, window_bounds = array<i64: 8, 4>}, {pipeline_mode = #tpu.pipeline_mode<synchronous>, transform_indices = @transform_1, window_bounds = array<i64: 1, 40>}, {pipeline_mode = #tpu.pipeline_mode<synchronous>, transform_indices = @transform_2, window_bounds = array<i64: 1, 40>}, {pipeline_mode = #tpu.pipeline_mode<synchronous>, transform_indices = @transform_3, window_bounds = array<i64: 40, 32>}, {pipeline_mode = #tpu.pipeline_mode<synchronous>, transform_indices = @transform_4, window_bounds = array<i64: 1, 32>}, {pipeline_mode = #tpu.pipeline_mode<synchronous>, transform_indices = @transform_5, window_bounds = array<i64: 32, 32>}, {pipeline_mode = #tpu.pipeline_mode<synchronous>, transform_indices = @transform_6, window_bounds = array<i64: 1, 32>}, {pipeline_mode = #tpu.pipeline_mode<synchronous>, transform_indices = @transform_7, window_bounds = array<i64: 32, 32>}, {pipeline_mode = #tpu.pipeline_mode<synchronous>, transform_indices = @transform_8, window_bounds = array<i64: 1, 32>}, {pipeline_mode = #tpu.pipeline_mode<synchronous>, transform_indices = @transform_9, window_bounds = array<i64: 32, 4>}, {pipeline_mode = #tpu.pipeline_mode<synchronous>, transform_indices = @transform_10, window_bounds = array<i64: 1, 4>}, {transform_indices = @transform_11, window_bounds = array<i64: 8, 4>}]} {
    %c0 = arith.constant 0 : index
    %c0_0 = arith.constant 0 : index
    %0 = vector.load %arg1[%c0, %c0_0] : memref<8x4xf32, #tpu.memory_space<vmem>>, vector<8x4xf32>
    %1 = tpu.concatenate %0, %0, %0, %0, %0, %0, %0, %0, %0, %0 in 1 : vector<8x4xf32>, vector<8x4xf32>, vector<8x4xf32>, vector<8x4xf32>, vector<8x4xf32>, vector<8x4xf32>, vector<8x4xf32>, vector<8x4xf32>, vector<8x4xf32>, vector<8x4xf32> -> vector<8x40xf32>
    %c0_1 = arith.constant 0 : index
    %c0_2 = arith.constant 0 : index
    %2 = vector.load %arg2[%c0_1, %c0_2] : memref<1x40xf32, #tpu.memory_space<vmem>>, vector<1x40xf32>
    %3 = vector.broadcast %2 : vector<1x40xf32> to vector<8x40xf32>
    %4 = arith.mulf %1, %3 : vector<8x40xf32>
    %c0_3 = arith.constant 0 : index
    %c0_4 = arith.constant 0 : index
    %5 = vector.load %arg3[%c0_3, %c0_4] : memref<1x40xf32, #tpu.memory_space<vmem>>, vector<1x40xf32>
    %6 = vector.broadcast %5 : vector<1x40xf32> to vector<8x40xf32>
    %7 = arith.addf %4, %6 : vector<8x40xf32>
    %8 = math.sin %7 : vector<8x40xf32>
    %c0_5 = arith.constant 0 : index
    %c0_6 = arith.constant 0 : index
    %9 = vector.load %arg4[%c0_5, %c0_6] : memref<40x32xf32, #tpu.memory_space<vmem>>, vector<40x32xf32>
    %cst = arith.constant dense<0.000000e+00> : vector<8x32xf32>
    %10 = tpu.matmul %8, %9, %cst {dimension_numbers = #tpu.dot_dimension_numbers<[1], [0], [0], [1], [0, 0, 1, 1], [], []>} : vector<8x40xf32>, vector<40x32xf32>, vector<8x32xf32> -> vector<8x32xf32>
    %c0_7 = arith.constant 0 : index
    %c0_8 = arith.constant 0 : index
    %11 = vector.load %arg5[%c0_7, %c0_8] : memref<1x32xf32, #tpu.memory_space<vmem>>, vector<1x32xf32>
    %12 = vector.broadcast %11 : vector<1x32xf32> to vector<8x32xf32>
    %13 = arith.addf %10, %12 : vector<8x32xf32>
    %cst_9 = arith.constant 0.000000e+00 : f32
    %14 = vector.broadcast %cst_9 : f32 to vector<8x32xf32>
    %15 = arith.cmpf ogt, %13, %14 : vector<8x32xf32>
    %cst_10 = arith.constant 2.000000e-01 : f32
    %16 = vector.broadcast %cst_10 : f32 to vector<8x32xf32>
    %17 = arith.mulf %16, %13 : vector<8x32xf32>
    %18 = arith.select %15, %13, %17 : vector<8x32xi1>, vector<8x32xf32>
    %c0_11 = arith.constant 0 : index
    %c0_12 = arith.constant 0 : index
    %19 = vector.load %arg6[%c0_11, %c0_12] : memref<32x32xf32, #tpu.memory_space<vmem>>, vector<32x32xf32>
    %cst_13 = arith.constant dense<0.000000e+00> : vector<8x32xf32>
    %20 = tpu.matmul %18, %19, %cst_13 {dimension_numbers = #tpu.dot_dimension_numbers<[1], [0], [0], [1], [0, 0, 1, 1], [], []>} : vector<8x32xf32>, vector<32x32xf32>, vector<8x32xf32> -> vector<8x32xf32>
    %c0_14 = arith.constant 0 : index
    %c0_15 = arith.constant 0 : index
    %21 = vector.load %arg7[%c0_14, %c0_15] : memref<1x32xf32, #tpu.memory_space<vmem>>, vector<1x32xf32>
    %22 = vector.broadcast %21 : vector<1x32xf32> to vector<8x32xf32>
    %23 = arith.addf %20, %22 : vector<8x32xf32>
    %cst_16 = arith.constant 0.000000e+00 : f32
    %24 = vector.broadcast %cst_16 : f32 to vector<8x32xf32>
    %25 = arith.cmpf ogt, %23, %24 : vector<8x32xf32>
    %cst_17 = arith.constant 2.000000e-01 : f32
    %26 = vector.broadcast %cst_17 : f32 to vector<8x32xf32>
    %27 = arith.mulf %26, %23 : vector<8x32xf32>
    %28 = arith.select %25, %23, %27 : vector<8x32xi1>, vector<8x32xf32>
    %c0_18 = arith.constant 0 : index
    %c0_19 = arith.constant 0 : index
    %29 = vector.load %arg8[%c0_18, %c0_19] : memref<32x32xf32, #tpu.memory_space<vmem>>, vector<32x32xf32>
    %cst_20 = arith.constant dense<0.000000e+00> : vector<8x32xf32>
    %30 = tpu.matmul %28, %29, %cst_20 {dimension_numbers = #tpu.dot_dimension_numbers<[1], [0], [0], [1], [0, 0, 1, 1], [], []>} : vector<8x32xf32>, vector<32x32xf32>, vector<8x32xf32> -> vector<8x32xf32>
    %c0_21 = arith.constant 0 : index
    %c0_22 = arith.constant 0 : index
    %31 = vector.load %arg9[%c0_21, %c0_22] : memref<1x32xf32, #tpu.memory_space<vmem>>, vector<1x32xf32>
    %32 = vector.broadcast %31 : vector<1x32xf32> to vector<8x32xf32>
    %33 = arith.addf %30, %32 : vector<8x32xf32>
    %cst_23 = arith.constant 0.000000e+00 : f32
    %34 = vector.broadcast %cst_23 : f32 to vector<8x32xf32>
    %35 = arith.cmpf ogt, %33, %34 : vector<8x32xf32>
    %cst_24 = arith.constant 2.000000e-01 : f32
    %36 = vector.broadcast %cst_24 : f32 to vector<8x32xf32>
    %37 = arith.mulf %36, %33 : vector<8x32xf32>
    %38 = arith.select %35, %33, %37 : vector<8x32xi1>, vector<8x32xf32>
    %c0_25 = arith.constant 0 : index
    %c0_26 = arith.constant 0 : index
    %39 = vector.load %arg10[%c0_25, %c0_26] : memref<32x4xf32, #tpu.memory_space<vmem>>, vector<32x4xf32>
    %cst_27 = arith.constant dense<0.000000e+00> : vector<8x4xf32>
    %40 = tpu.matmul %38, %39, %cst_27 {dimension_numbers = #tpu.dot_dimension_numbers<[1], [0], [0], [1], [0, 0, 1, 1], [], []>} : vector<8x32xf32>, vector<32x4xf32>, vector<8x4xf32> -> vector<8x4xf32>
    %c0_28 = arith.constant 0 : index
    %c0_29 = arith.constant 0 : index
    %41 = vector.load %arg11[%c0_28, %c0_29] : memref<1x4xf32, #tpu.memory_space<vmem>>, vector<1x4xf32>
    %42 = vector.broadcast %41 : vector<1x4xf32> to vector<8x4xf32>
    %43 = arith.addf %40, %42 : vector<8x4xf32>
    %c0_30 = arith.constant 0 : index
    %c0_31 = arith.constant 0 : index
    %44 = vector.load %arg12[%c0_30, %c0_31] : memref<8x4xf32, #tpu.memory_space<vmem>>, vector<8x4xf32>
    tpu.vector_store %arg12[%c0_30, %c0_31], %43 {strides = array<i32>} : memref<8x4xf32, #tpu.memory_space<vmem>>, vector<8x4xf32>,
    return
  }
  func.func @transform_0(%arg0: i32) -> (i32, i32) {
    %c0_i32 = arith.constant 0 : i32
    %c0_i32_0 = arith.constant 0 : i32
    return %arg0, %c0_i32 : i32, i32
  }
  func.func @transform_1(%arg0: i32) -> (i32, i32) {
    %c0_i32 = arith.constant 0 : i32
    %c0_i32_0 = arith.constant 0 : i32
    %c0_i32_1 = arith.constant 0 : i32
    return %c0_i32, %c0_i32_0 : i32, i32
  }
  func.func @transform_2(%arg0: i32) -> (i32, i32) {
    %c0_i32 = arith.constant 0 : i32
    %c0_i32_0 = arith.constant 0 : i32
    %c0_i32_1 = arith.constant 0 : i32
    return %c0_i32, %c0_i32_0 : i32, i32
  }
  func.func @transform_3(%arg0: i32) -> (i32, i32) {
    %c0_i32 = arith.constant 0 : i32
    %c0_i32_0 = arith.constant 0 : i32
    %c0_i32_1 = arith.constant 0 : i32
    return %c0_i32, %c0_i32_0 : i32, i32
  }
  func.func @transform_4(%arg0: i32) -> (i32, i32) {
    %c0_i32 = arith.constant 0 : i32
    %c0_i32_0 = arith.constant 0 : i32
    %c0_i32_1 = arith.constant 0 : i32
    return %c0_i32, %c0_i32_0 : i32, i32
  }
  func.func @transform_5(%arg0: i32) -> (i32, i32) {
    %c0_i32 = arith.constant 0 : i32
    %c0_i32_0 = arith.constant 0 : i32
    %c0_i32_1 = arith.constant 0 : i32
    return %c0_i32, %c0_i32_0 : i32, i32
  }
  func.func @transform_6(%arg0: i32) -> (i32, i32) {
    %c0_i32 = arith.constant 0 : i32
    %c0_i32_0 = arith.constant 0 : i32
    %c0_i32_1 = arith.constant 0 : i32
    return %c0_i32, %c0_i32_0 : i32, i32
  }
  func.func @transform_7(%arg0: i32) -> (i32, i32) {
    %c0_i32 = arith.constant 0 : i32
    %c0_i32_0 = arith.constant 0 : i32
    %c0_i32_1 = arith.constant 0 : i32
    return %c0_i32, %c0_i32_0 : i32, i32
  }
  func.func @transform_8(%arg0: i32) -> (i32, i32) {
    %c0_i32 = arith.constant 0 : i32
    %c0_i32_0 = arith.constant 0 : i32
    %c0_i32_1 = arith.constant 0 : i32
    return %c0_i32, %c0_i32_0 : i32, i32
  }
  func.func @transform_9(%arg0: i32) -> (i32, i32) {
    %c0_i32 = arith.constant 0 : i32
    %c0_i32_0 = arith.constant 0 : i32
    %c0_i32_1 = arith.constant 0 : i32
    return %c0_i32, %c0_i32_0 : i32, i32
  }
  func.func @transform_10(%arg0: i32) -> (i32, i32) {
    %c0_i32 = arith.constant 0 : i32
    %c0_i32_0 = arith.constant 0 : i32
    %c0_i32_1 = arith.constant 0 : i32
    return %c0_i32, %c0_i32_0 : i32, i32
  }
  func.func @transform_11(%arg0: i32) -> (i32, i32) {
    %c0_i32 = arith.constant 0 : i32
    %c0_i32_0 = arith.constant 0 : i32
    return %arg0, %c0_i32 : i32, i32
  }
}

</mosaic_0001>

<bundles_post_ra>
// kernel: tpu_custom_call.1
= control target key start
LH: loop header
LB: loop body
LE: loop exit
PB: predicated region body
PF: predicated region fallthrough
CT: control target
= control target key end

     0   :  { %s663_s19 = smov 4   ;;  %s664_s20 = smov 12   ;;  %v672_v1 = vmov 0.0   ;;  %vm673_vm0 = vmmov 0   ;;  %vm67_vm1 = vcmask 31744   ;;  %vm69_vm2 = vcmask 64512   ;;  %s867_s0 = inlined_call_operand.vmem [shape: f32[8,4], index: 0, kind: input, shape index: {}]   ;;  %s868_s3 = inlined_call_operand.vmem [shape: f32[40,32], index: 3, kind: input, shape index: {}]   ;;  %s869_s5 = inlined_call_operand.vmem [shape: f32[32,32], index: 5, kind: input, shape index: {}]   ;;  %s870_s1 = inlined_call_operand.vmem [shape: f32[1,40], index: 1, kind: input, shape index: {}]   ;;  %s871_s2 = inlined_call_operand.vmem [shape: f32[1,40], index: 2, kind: input, shape index: {}]   ;;  %s872_s4 = inlined_call_operand.vmem [shape: f32[1,32], index: 4, kind: input, shape index: {}]   ;;  %s873_s7 = inlined_call_operand.vmem [shape: f32[32,32], index: 7, kind: input, shape index: {}]   ;;  %s874_s9 = inlined_call_operand.vmem [shape: f32[32,4], index: 9, kind: input, shape index: {}]   ;;  %s875_s6 = inlined_call_operand.vmem [shape: f32[1,32], index: 6, kind: input, shape index: {}]   ;;  %s876_s8 = inlined_call_operand.vmem [shape: f32[1,32], index: 8, kind: input, shape index: {}]   ;;  %s877_s10 = inlined_call_operand.vmem [shape: f32[1,4], index: 10, kind: input, shape index: {}]   ;;  %s878_s11 = inlined_call_operand.vmem [shape: f32[8,4], index: 11, kind: output, shape index: {}]  }
   0x1   :  { %v38_v0 = vld [vmem:[%s867_s0] sm:$0xff]  ;;  %s665_s21 = smov 8   ;;  %s666_s22 = smov 16   ;;  %592 = vmatprep.subr.mxu0 %v672_v1  ;;  %v208_v3 = vld [vmem:[%s868_s3 + $0x18] sm:$0xff]  ;;  %602 = vmatprep.mubr.msk.f32.mxu0 %vm673_vm0, %v672_v1  ;;  %v207_v4 = vld [vmem:[%s868_s3 + $0x10] sm:$0xff]  ;;  %vm71_vm3 = vcmask 97280  }
   0x2   :  { %40 = vrot.lane.b32.xlu0 %v38_v0, %s663_s19  ;;  %46 = vrot.lane.b32.xlu1 %v38_v0, %s664_s20  ;;  %s667_s23 = smov 20   ;;  %s668_s24 = smov 24   ;;  %v209_v2 = vld [vmem:[%s868_s3 + $0x20] sm:$0xff]  ;;  %v206_v5 = vld [vmem:[%s868_s3 + $0x8] sm:$0xff]  ;;  %vm73_vm4 = vcmask 130048   ;;  %vm75_vm5 = vcmask 162816  }
   0x3   :  { %s669_s25 = smov 28   ;;  %s670_s26 = smov 32   ;;  %593 = vmatpush3.msra.mxu0 %v209_v2  ;;  %605 = vmatprep.subr.mxu1 %v672_v1  ;;  %v205_v6 = vld [vmem:[%s868_s3] sm:$0xff]  ;;  %v297_v7 = vld [vmem:[%s869_s5 + $0x18] sm:$0xff]  ;;  %vm77_vm6 = vcmask 195584   ;;  %vm79_vm7 = vcmask 228352  }
   0x4   :  { %s671_s27 = smov 36   ;;  %594 = vmatprep.subr.mxu0 %v672_v1  ;;  %613 = vmatprep.mubr.msk.f32.mxu1 %vm673_vm0, %v672_v1  ;;  %vm81_vm8 = vcmask 261120   ;;  %vm83_vm9 = vcmask 293888   ;;  %v557_v23 = vld [vmem:[%s870_s1] ss:$0 sm:$0xff] }
   0x5   :  { %595 = vmatpush3.msra.mxu0 %v208_v3  ;;  %606 = vmatpush3.msra.mxu1 %v297_v7  ;;  %v558_v26 = vld [vmem:[%s871_s2] ss:$0 sm:$0xff]  ;;  %v674_v40 = vmov 683565275   ;;  %v675_v42 = vmov 2475754826  }
   0x6   :  { %43 = vrot.lane.b32.xlu0 %v38_v0, %s665_s21  ;;  %49 = vrot.lane.b32.xlu1 %v38_v0, %s666_s22  ;;  %v676_v45 = vmov 2131351028   ;;  %v677_v48 = vmov 2102212464   ;;  %v678_v51 = vmov 920167782  }
   0x7   :  { %596 = vmatprep.subr.mxu0 %v672_v1  ;;  %607 = vmatprep.subr.mxu1 %v672_v1  ;;  %v679_v54 = vmov 1326507024  }
   0x8   :  { %597 = vmatpush3.msra.mxu0 %v207_v4 }
   0x9   :  { %598 = vmatprep.subr.mxu0 %v672_v1 }
   0xa   :  { %52 = vrot.lane.b32.xlu0 %v38_v0, %s667_s23  ;;  %55 = vrot.lane.b32.xlu1 %v38_v0, %s668_s24 }
   0xb   :  { %599 = vmatpush3.msra.mxu0 %v206_v5 }
   0xc   :  { %600 = vmatprep.subr.mxu0 %v672_v1 }
   0xd   :  { %601 = vmatpush3.msra.mxu0 %v205_v6 }
   0xe   :  { %58 = vrot.lane.b32.xlu0 %v38_v0, %s669_s25  ;;  %61 = vrot.lane.b32.xlu1 %v38_v0, %s670_s26 }
   0xf   :  { %627 = vmatprep.subr.mxu0 %v672_v1 }
  0x12   :  { %64 = vrot.lane.b32.xlu0 %v38_v0, %s671_s27 }
  0x74   :  { %v41_v8 = vpop.permute.xlu0 %40  ;;  %v47_v9 = vpop.permute.xlu1 %46 }
  0x75   :  { %v68_v10 = vsel %vm67_vm1, %v38_v0, %v41_v8 }
  0x78   :  { %v44_v11 = vpop.permute.xlu0 %43  ;;  %v50_v12 = vpop.permute.xlu1 %49 }
  0x79   :  { %v70_v13 = vsel %vm69_vm2, %v68_v10, %v44_v11 }
  0x7a   :  { %v72_v14 = vsel %vm71_vm3, %v70_v13, %v47_v9 }
  0x7b   :  { %v74_v15 = vsel %vm73_vm4, %v72_v14, %v50_v12 }
  0x7c   :  { %v53_v16 = vpop.permute.xlu0 %52  ;;  %v56_v17 = vpop.permute.xlu1 %55 }
  0x7d   :  { %v76_v18 = vsel %vm75_vm5, %v74_v15, %v53_v16 }
  0x7e   :  { %v78_v19 = vsel %vm77_vm6, %v76_v18, %v56_v17 }
  0x80   :  { %v59_v20 = vpop.permute.xlu0 %58  ;;  %v62_v22 = vpop.permute.xlu1 %61 }
  0x81   :  { %v80_v21 = vsel %vm79_vm7, %v78_v19, %v59_v20 }
  0x82   :  { %v82_v24 = vsel %vm81_vm8, %v80_v21, %v62_v22 }
  0x84   :  { %v65_v25 = vpop.permute.xlu0 %64 }
  0x85   :  { %v84_v27 = vsel %vm83_vm9, %v82_v24, %v65_v25  ;;  %vm217_vm9 = vcmask 326656  }
  0x86   :  { %v92_v28 = vmul.f32 %v557_v23, %v84_v27 }
  0x88   :  { %v781_v29 = vadd.f32 %v558_v26, %v92_v28 }
  0x8a   :  { %v104_v30 = vand.u32 2139095040, %v781_v29  ;;  %v101_v34 = vand.u32 2147483647, %v781_v29  ;;  %vm103_vm3 = vcmp.lt.s32.totalorder %v781_v29, 0 }
  0x8c   :  { %v105_v31 = vshrl.u32 %v104_v30, 23  ;;  %v108_v38 = vand.u32 8388607, %v101_v34  ;;  %vm102_vm4 = vcmp.le.f32.partialorder %v101_v34, 0.7853982 }
  0x8e   :  { %v559_v32 = vadd.s32 4294967169, %v105_v31  ;;  %v109_v56 = vor.u32 8388608, %v108_v38 }
  0x90   :  { %v111_v33 = vadd.s32 1, %v559_v32  ;;  %v149_v7 = vshll.u32 %v109_v56, 8 }
  0x92   :  { %vm112_vm10 = vcmp.gt.s32.totalorder %v111_v33, 0 }
  0x93   :  { %v113_v35 = vsel %vm112_vm10, %v111_v33, 0  ;;  %vm193_vm10 = vweird.f32 %v781_v29 }
  0x94   :  { %v115_v36 = vand.u32 31, %v113_v35  ;;  %v114_v39 = vshrl.u32 %v113_v35, 5 }
  0x96   :  { %v116_v37 = vsub.s32 32, %v115_v36  ;;  %v118_v41 = vshll.u32 %v674_v40, %v115_v36  ;;  %v121_v43 = vshll.u32 %v675_v42, %v115_v36  ;;  %v124_v47 = vshll.u32 %v676_v45, %v115_v36 }
  0x97   :  { %v127_v50 = vshll.u32 %v677_v48, %v115_v36  ;;  %v130_v53 = vshll.u32 %v678_v51, %v115_v36  ;;  %vm133_vm11 = vcmp.lt.s32.totalorder %v114_v39, 1  ;;  %vm136_vm12 = vcmp.lt.s32.totalorder %v114_v39, 4 }
  0x98   :  { %v119_v44 = vshrl.u32 %v675_v42, %v116_v37  ;;  %v122_v46 = vshrl.u32 %v676_v45, %v116_v37  ;;  %v125_v49 = vshrl.u32 %v677_v48, %v116_v37  ;;  %v128_v52 = vshrl.u32 %v678_v51, %v116_v37 }
  0x99   :  { %v131_v55 = vshrl.u32 %v679_v54, %v116_v37  ;;  %v117_v2 = vshrl.u32 %v674_v40, %v116_v37  ;;  %vm135_vm13 = vcmp.lt.s32.totalorder %v114_v39, 3  ;;  %vm134_vm14 = vcmp.lt.s32.totalorder %v114_v39, 2 }
  0x9a   :  { %v120_v57 = vor.u32 %v119_v44, %v118_v41  ;;  %v123_v58 = vor.u32 %v122_v46, %v121_v43  ;;  %v126_v59 = vor.u32 %v125_v49, %v124_v47  ;;  %v129_v60 = vor.u32 %v128_v52, %v127_v50 }
  0x9b   :  { %v132_v61 = vor.u32 %v131_v55, %v130_v53 }
  0x9c   :  { %v138_v62 = vsel %vm136_vm12, %v126_v59, 2102212464  ;;  %v141_v63 = vsel %vm133_vm11, %v120_v57, %v123_v58  ;;  %v145_v0 = vsel %vm133_vm11, %v123_v58, %v126_v59  ;;  %v142_v3 = vsel %vm136_vm12, %v129_v60, 920167782 }
  0x9d   :  { %v146_v4 = vsel %vm136_vm12, %v132_v61, 1326507024  ;;  %v143_v5 = vsel %vm135_vm13, %v126_v59, %v142_v3  ;;  %v137_v8 = vsel %vm133_vm11, %v117_v2, %v120_v57  ;;  %v139_v9 = vsel %vm135_vm13, %v123_v58, %v138_v62  ;;  %v296_v59 = vld [vmem:[%s869_s5 + $0x10] sm:$0xff]  ;;  %v563_v61 = vld [vmem:[%s872_s4] ss:$0 sm:$0xff]  ;;  %v384_v3 = vld [vmem:[%s873_s7 + $0x18] sm:$0xff] }
  0x9e   :  { %v147_v6 = vsel %vm135_vm13, %v129_v60, %v146_v4  ;;  %v144_v10 = vsel %vm134_vm14, %v141_v63, %v143_v5  ;;  %v140_v16 = vsel %vm134_vm14, %v137_v8, %v139_v9  ;;  %608 = vmatpush3.msra.mxu1 %v296_v59  ;;  %v295_v60 = vld [vmem:[%s869_s5 + $0x8] sm:$0xff]  ;;  %v383_v5 = vld [vmem:[%s873_s7 + $0x10] sm:$0xff]  ;;  %v471_v8 = vld [vmem:[%s874_s9 + $0x18] sm:$0xff] }
  0x9f   :  { %v148_v11 = vsel %vm134_vm14, %v145_v0, %v147_v6  ;;  %v790_v14 = vmul.u32.u64.low %v149_v7, %v144_v10  ;;  %v791_v15 = vmul.u32.u64.high %v149_v7, %v144_v10, %v790_v14  ;;  %v156_v18 = vmul.u32 %v149_v7, %v140_v16  ;;  %609 = vmatprep.subr.mxu1 %v672_v1  ;;  %v382_v6 = vld [vmem:[%s873_s7 + $0x8] sm:$0xff]  ;;  %v565_v9 = vld [vmem:[%s875_s6] ss:$0 sm:$0xff] }
  0xa0   :  { %v787_v12 = vmul.u32.u64.low %v149_v7, %v148_v11  ;;  %v788_v13 = vmul.u32.u64.high %v149_v7, %v148_v11, %v787_v12  ;;  %610 = vmatpush3.msra.mxu1 %v295_v60  ;;  %v381_v7 = vld [vmem:[%s873_s7] sm:$0xff]  ;;  %v469_v16 = vld [vmem:[%s874_s9 + $0x8] sm:$0xff] }
  0xa1   :  { %v159_v17 = vadd.s32 1, %v791_v15  ;;  %611 = vmatprep.subr.mxu1 %v672_v1 }
  0xa2   :  { %vm158_vm15 = vc.u32 %v788_v13, %v790_v14  ;;  %v157_v31 = vadd.s32 %v790_v14, %v788_v13 }
  0xa3   :  { %v160_v19 = vsel %vm158_vm15, %v159_v17, %v791_v15  ;;  %v470_v15 = vld [vmem:[%s874_s9 + $0x10] sm:$0xff]  ;;  %v468_v17 = vld [vmem:[%s874_s9] sm:$0xff] }
  0xa4   :  { %v161_v20 = vadd.s32 %v160_v19, %v156_v18  ;;  %v567_v18 = vld [vmem:[%s876_s8] ss:$0 sm:$0xff] }
  0xa6   :  { %v162_v21 = vadd.s32 536870912, %v161_v20 }
  0xa8   :  { %v163_v22 = vshrl.u32 %v162_v21, 30 }
  0xaa   :  { %v164_v23 = vshll.u32 %v163_v22, 30  ;;  %v187_v45 = vsub.s32 4, %v163_v22 }
  0xac   :  { %v165_v24 = vsub.s32 %v161_v20, %v164_v23  ;;  %v188_v48 = vsel %vm103_vm3, %v187_v45, %v163_v22 }
  0xad   :  { %v190_v49 = vsel %vm102_vm4, 0, %v188_v48 }
  0xae   :  { %v167_v25 = vsub.s32 0, %v165_v24  ;;  %v194_v50 = vadd.s32 3, %v190_v49 }
  0xb0   :  { %v560_v26 = vmin.u32 %v167_v25, %v165_v24  ;;  %v195_v51 = vand.u32 3, %v194_v50 }
  0xb2   :  { %v169_v27 = vclz %v560_v26  ;;  %vm200_vm5 = vcmp.eq.s32.totalorder %v195_v51, 2  ;;  %vm197_vm6 = vcmp.eq.s32.totalorder %v195_v51, 0  ;;  %vm196_vm7 = vcmp.lt.s32.totalorder %v195_v51, 2 }
  0xb4   :  { %v561_v28 = vadd.s32 4294967294, %v169_v27 }
  0xb6   :  { %vm562_vm2 = vcmp.lt.s32.totalorder %v561_v28, 0 }
  0xb7   :  { %v172_v30 = vsel %vm562_vm2, 0, %v561_v28 }
  0xb8   :  { %v173_v32 = vsub.s32 32, %v172_v30  ;;  %v177_v33 = vsub.s32 4294967266, %v172_v30  ;;  %v174_v35 = vshll.u32 %v165_v24, %v172_v30 }
  0xba   :  { %v175_v36 = vshrl.u32 %v157_v31, %v173_v32  ;;  %v178_v37 = vadd.s32 127, %v177_v33 }
  0xbc   :  { %v176_v38 = vor.u32 %v175_v36, %v174_v35  ;;  %v179_v39 = vshll.u32 %v178_v37, 23 }
  0xbe   :  { %v180_v40 = vor.u32 4788187, %v179_v39  ;;  %v183_v42 = vcvt.s32.f32 %v176_v38 }
  0xc0   :  { %v181_v41 = vand.u32 2147483647, %v180_v40 }
  0xc2   :  { %v184_v43 = vmul.f32 %v183_v42, %v181_v41 }
  0xc4   :  { %v185_v44 = vxor.u32 2147483648, %v184_v43 }
  0xc6   :  { %v186_v46 = vsel %vm103_vm3, %v185_v44, %v184_v43 }
  0xc7   :  { %v189_v47 = vsel %vm102_vm4, %v781_v29, %v186_v46  ;;  %v294_v29 = vld [vmem:[%s869_s5] sm:$0xff] }
  0xc8   :  { %659 = vcosq.f32 %v189_v47  ;;  %612 = vmatpush3.msra.mxu1 %v294_v29 }
  0xc9   :  { %661 = vsinq.f32 %v189_v47  ;;  %616 = vmatprep.subr.mxu1 %v672_v1 }
  0xd5   :  { %v660_v52 = vpop.eup %659 }
  0xd6   :  { %v662_v53 = vpop.eup %661  ;;  %v201_v54 = vxor.u32 2147483648, %v660_v52 }
  0xd7   :  { %v198_v55 = vxor.u32 2147483648, %v662_v53 }
  0xd8   :  { %v202_v56 = vsel %vm200_vm5, %v201_v54, %v662_v53 }
  0xd9   :  { %v199_v57 = vsel %vm197_vm6, %v660_v52, %v198_v55 }
  0xda   :  { %v203_v34 = vsel %vm196_vm7, %v199_v57, %v202_v56 }
  0xdb   :  { %v204_v58 = vsel %vm193_vm10, nan, %v203_v34 }
  0xdc   :  { %603 = vmatmul.mubr.msk.f32.vlgmr.msra.gmra.mxu0 %vm217_vm9, %v204_v58 }
  0xdd   :  { %635 = vmatprep.mubr.msk.f32.mxu0 %vm673_vm0, %v672_v1  ;;  %628 = vmatpush3.msra.mxu0 %v471_v8 }
  0xde   :  { %629 = vmatprep.subr.mxu0 %v672_v1 }
  0xdf   :  { %630 = vmatpush3.msra.mxu0 %v470_v15 }
  0xe0   :  { %631 = vmatprep.subr.mxu0 %v672_v1 }
  0xe1   :  { %632 = vmatpush3.msra.mxu0 %v469_v16 }
  0xe2   :  { %633 = vmatprep.subr.mxu0 %v672_v1 }
  0xe3   :  { %634 = vmatpush3.msra.mxu0 %v468_v17 }
 0x19c   :  { %v287_v62 = vpop.f32.mrf.mxu0 }
 0x19d   :  { %v288_v63 = vadd.f32 %v563_v61, %v287_v62 }
 0x19e   :  { %v604_v0 = vpop.f32.mrf.mxu0 }
 0x19f   :  { %vm291_vm11 = vcmp.gt.f32.partialorder %v288_v63, 0.0  ;;  %v292_v2 = vmul.f32 0.2, %v288_v63 }
 0x1a1   :  { %v293_v4 = vsel %vm291_vm11, %v288_v63, %v292_v2 }
 0x1a2   :  { %614 = vmatmul.mubr.msk.f32.vlgmr.msra.gmra.mxu1 %vm81_vm8, %v293_v4 }
 0x1a3   :  { %617 = vmatpush3.msra.mxu1 %v384_v3  ;;  %624 = vmatprep.mubr.msk.f32.mxu1 %vm673_vm0, %v672_v1 }
 0x1a4   :  { %618 = vmatprep.subr.mxu1 %v672_v1 }
 0x1a5   :  { %619 = vmatpush3.msra.mxu1 %v383_v5 }
 0x1a6   :  { %620 = vmatprep.subr.mxu1 %v672_v1 }
 0x1a7   :  { %621 = vmatpush3.msra.mxu1 %v382_v6 }
 0x1a8   :  { %622 = vmatprep.subr.mxu1 %v672_v1  ;;  %v569_v1 = vld [vmem:[%s877_s10] ss:$0 sm:$0xff] }
 0x1a9   :  { %623 = vmatpush3.msra.mxu1 %v381_v7 }
 0x262   :  { %v374_v10 = vpop.f32.mrf.mxu1 }
 0x263   :  { %v375_v11 = vadd.f32 %v565_v9, %v374_v10 }
 0x264   :  { %v615_v12 = vpop.f32.mrf.mxu1 }
 0x265   :  { %vm378_vm0 = vcmp.gt.f32.partialorder %v375_v11, 0.0  ;;  %v379_v13 = vmul.f32 0.2, %v375_v11 }
 0x267   :  { %v380_v14 = vsel %vm378_vm0, %v375_v11, %v379_v13 }
 0x268   :  { %625 = vmatmul.mubr.msk.f32.vlgmr.msra.gmra.mxu1 %vm81_vm8, %v380_v14 }
 0x328   :  { %v461_v19 = vpop.f32.mrf.mxu1 }
 0x329   :  { %v462_v20 = vadd.f32 %v567_v18, %v461_v19 }
 0x32a   :  { %v626_v21 = vpop.f32.mrf.mxu1 }
 0x32b   :  { %vm465_vm12 = vcmp.gt.f32.partialorder %v462_v20, 0.0  ;;  %v466_v22 = vmul.f32 0.2, %v462_v20 }
 0x32d   :  { %v467_v23 = vsel %vm465_vm12, %v462_v20, %v466_v22 }
 0x32e   :  { %636 = vmatmul.mubr.msk.f32.vlgmr.msra.gmra.mxu0 %vm81_vm8, %v467_v23 }
 0x3ee   :  { %v548_v24 = vpop.f32.mrf.mxu0 }
 0x3ef   :  { %v549_v25 = vadd.f32 %v569_v1, %v548_v24 }
 0x3f0   :  { %v637_v26 = vpop.f32.mrf.mxu0 }
 0x3f1   :  { %552 = vst.msk [vmem:[%s878_s11] sm:$0xff] %vm67_vm1, %v549_v25 }

</bundles_post_ra>
